<compile_context>
chip_gen: v5e
topology: v5e:2x2
jax: 0.10.0
libtpu: 0.0.40
codegen_flags: <defaults>
</compile_context>

<pallas_src>
import jax
import jax.numpy as jnp
from jax.experimental import pallas as pl
from jax.experimental.pallas import tpu as pltpu


def _shift_clamped(x, axis, delta):
    """y[..., i, ...] = x[..., clamp(i + delta, 0, n-1), ...] along `axis`.

    delta is +1 or -1.  Fast path: pltpu.roll (XLU) plus a single-row/column
    jnp.where fixup, used for 2D f32 tiles with a native (8,128)-aligned
    layout.  Fallback: concatenate-based shift (correct for any shape/dtype).
    """
    n = x.shape[axis]
    if n == 1:
        return x
    use_roll = (
        x.ndim == 2
        and x.dtype.itemsize == 4
        and axis in (0, 1)
        and x.shape[0] % 8 == 0
        and x.shape[1] % 128 == 0
    )
    if use_roll:
        idx = jax.lax.broadcasted_iota(jnp.int32, x.shape, axis)
        rolled = pltpu.roll(x, shift=(-delta) % n, axis=axis)
        if delta > 0:
            return jnp.where(idx == n - 1, x, rolled)   # y[n-1] = x[n-1]
        return jnp.where(idx == 0, x, rolled)           # y[0]   = x[0]

    def _s(a, b):
        s = [slice(None)] * x.ndim
        s[axis] = slice(a, b)
        return tuple(s)

    if delta > 0:
        return jnp.concatenate([x[_s(1, None)], x[_s(n - 1, None)]], axis=axis)
    return jnp.concatenate([x[_s(0, 1)], x[_s(0, n - 1)]], axis=axis)


def _img_grad_whole_kernel(x_ref, out_ref):
    # x_ref:   (TB, H, W)      VMEM
    # out_ref: (TB, 2, H, W)   VMEM
    x = x_ref[...]
    gh = _shift_clamped(x, 2, +1) - _shift_clamped(x, 2, -1)
    out_ref[:, 0, :, :] = gh.astype(out_ref.dtype)
    gv = _shift_clamped(x, 1, +1) - _shift_clamped(x, 1, -1)
    out_ref[:, 1, :, :] = gv.astype(out_ref.dtype)


def _img_grad_rowtiled_kernel(x_tile_ref, x_hbm_ref, out_ref, halo_ref, sem_ref):
    # x_tile_ref: (1, TH, W)    VMEM, auto-pipelined row tile (rows [r0, r0+TH))
    # x_hbm_ref:  (B, H, W)     HBM (memory_space=pl.ANY), only for 1-row halos
    # out_ref:    (1, 2, TH, W) VMEM
    # halo_ref:   (2, W)        VMEM scratch: row above tile, row below tile
    # sem_ref:    DMA semaphores, shape (2,)
    b = pl.program_id(0)
    rt = pl.program_id(1)
    th, w = x_tile_ref.shape[1], x_tile_ref.shape[2]
    h = x_hbm_ref.shape[1]
    r0 = rt * th
    top = jnp.maximum(r0 - 1, 0)        # replicate clamp at the top image edge
    bot = jnp.minimum(r0 + th, h - 1)   # replicate clamp at the bottom image edge

    cp_top = pltpu.make_async_copy(
        x_hbm_ref.at[b, pl.ds(top, 1), :], halo_ref.at[0:1, :], sem_ref.at[0])
    cp_bot = pltpu.make_async_copy(
        x_hbm_ref.at[b, pl.ds(bot, 1), :], halo_ref.at[1:2, :], sem_ref.at[1])
    cp_top.start()
    cp_bot.start()

    x = x_tile_ref[0]  # (TH, W)

    # Halo-free work first: it overlaps the tiny, latency-bound halo DMAs.
    gh = _shift_clamped(x, 1, +1) - _shift_clamped(x, 1, -1)
    out_ref[0, 0, :, :] = gh.astype(out_ref.dtype)

    below_i = _shift_clamped(x, 0, +1)   # below_i[i] = x[min(i+1, TH-1)]
    above_i = _shift_clamped(x, 0, -1)   # above_i[i] = x[max(i-1, 0)]
    rows = jax.lax.broadcasted_iota(jnp.int32, (th, w), 0)
    # Row index (within this tile) of the last valid image row; handles a
    # partial final tile when TH does not divide H.
    last_local = jnp.minimum(h - 1 - r0, th - 1)

    cp_top.wait()
    cp_bot.wait()
    above = jnp.where(rows == 0, halo_ref[0:1, :], above_i)
    below = jnp.where(rows == last_local, halo_ref[1:2, :], below_i)
    out_ref[0, 1, :, :] = (below - above).astype(out_ref.dtype)


_WHOLE_PATH_MAX_IMAGE_BYTES = 1 << 20   # tiny-image cutoff for the batched path


def _tpu_vmem_capacity_bytes():
    try:
        cap = int(pltpu.get_tpu_info().vmem_capacity_bytes)
        if cap >= (16 << 20):
            return cap
    except Exception:
        pass
    return 64 << 20   # conservative default (v7x per-core VMEM)


def image_gradient(x, *, row_tile=None):
    """x: (B, 1, H, W) -> (B, 2, H, W). Same forward as ImageGradient."""
    assert x.ndim == 4, x.ndim
    b, c, h, w = x.shape
    assert c == 1, c

    x3 = x.reshape(b, h, w)                       # metadata-only reshape
    itemsize = jnp.dtype(x.dtype).itemsize
    sub = max(8, 32 // itemsize)                  # sublane multiple for dtype
    per_image_bytes = 3 * h * w * itemsize        # 1 input + 2 output channels
    out_shape = jax.ShapeDtypeStruct((b, 2, h, w), x.dtype)

    cap = _tpu_vmem_capacity_bytes()
    vmem_limit = int(min(cap * 3 // 4, 112 << 20))  # 96 MiB v5e/v6e, 48 MiB v7x
    step_budget = max(cap // 10, 4 << 20)           # target in+out bytes / step

    if row_tile is not None:
        th = min(int(row_tile), h)
        assert th == h or th % sub == 0, (th, sub)
    elif per_image_bytes <= min(_WHOLE_PATH_MAX_IMAGE_BYTES, step_budget):
        th = None                                    # whole-image (batched) path
    else:
        th = step_budget // max(3 * w * itemsize, 1)
        th = max((th // sub) * sub, sub)             # W- and dtype-aware row tile
        th = min(th, h)

    if th is None:
        # Whole-image path: TB small images per grid step (amortizes per-step
        # overhead); keep >= 2 grid steps so both v7x cores have work.
        tb = max(1, step_budget // max(per_image_bytes, 1))
        if b >= 2:
            tb = min(tb, pl.cdiv(b, 2))
        tb = min(tb, b)
        return pl.pallas_call(
            _img_grad_whole_kernel,
            out_shape=out_shape,
            grid=(pl.cdiv(b, tb),),
            in_specs=[pl.BlockSpec((tb, h, w), lambda i: (i, 0, 0))],
            out_specs=pl.BlockSpec((tb, 2, h, w), lambda i: (i, 0, 0, 0)),
            compiler_params=pltpu.CompilerParams(
                dimension_semantics=("parallel",),
                vmem_limit_bytes=vmem_limit),
        )(x3)

    # Row-tiled path: center tile auto-pipelined, 1-row halos via manual DMA.
    return pl.pallas_call(
        _img_grad_rowtiled_kernel,
        out_shape=out_shape,
        grid=(b, pl.cdiv(h, th)),
        in_specs=[
            pl.BlockSpec((1, th, w), lambda i, r: (i, r, 0)),
            pl.BlockSpec(memory_space=pl.ANY),       # halo rows only
        ],
        out_specs=pl.BlockSpec((1, 2, th, w), lambda i, r: (i, 0, r, 0)),
        scratch_shapes=[
            pltpu.VMEM((2, w), x.dtype),
            pltpu.SemaphoreType.DMA((2,)),
        ],
        compiler_params=pltpu.CompilerParams(
            dimension_semantics=("parallel", "parallel"),
            vmem_limit_bytes=vmem_limit),
    )(x3, x3)


def _reference(x):
    # Pure-JAX reference of the same forward pass (for sanity check).
    xp = jnp.pad(x[:, 0], ((0, 0), (1, 1), (1, 1)), mode="edge")
    gh = xp[:, 1:-1, 2:] - xp[:, 1:-1, :-2]   # kernel_h: x[i, j+1] - x[i, j-1]
    gv = xp[:, 2:, 1:-1] - xp[:, :-2, 1:-1]   # kernel_v: x[i+1, j] - x[i-1, j]
    return jnp.stack([gh, gv], axis=1)


if __name__ == "__main__":
    key = jax.random.PRNGKey(0)
    k0, k1, k2 = jax.random.split(key, 3)

    # Small image (module requires C == 1): whole-image (batched) path.
    B, C, H, W = 2, 1, 16, 16
    x = jax.random.normal(k0, (B, C, H, W), dtype=jnp.float32)
    out = jax.block_until_ready(image_gradient(x))
    ref = _reference(x)
    assert out.shape == (B, 2, H, W), out.shape
    assert jnp.allclose(out, ref, atol=1e-5, rtol=1e-5), float(
        jnp.max(jnp.abs(out - ref)))

    # Row-tiled path on a lane-dense, (8,128)-aligned input: exercises the
    # pltpu.roll fast path and the manual halo DMAs.
    x2 = jax.random.normal(k1, (2, 1, 32, 128), dtype=jnp.float32)
    out2 = jax.block_until_ready(image_gradient(x2, row_tile=8))
    ref2 = _reference(x2)
    assert out2.shape == (2, 2, 32, 128), out2.shape
    assert jnp.allclose(out2, ref2, atol=1e-5, rtol=1e-5), float(
        jnp.max(jnp.abs(out2 - ref2)))

    # Row-tiled path with a partial last tile (H % TH != 0): exercises the
    # cdiv grid + dynamic last-row fixup (no fallback cliff).
    x_part = jax.random.normal(k2, (1, 1, 24, 128), dtype=jnp.float32)
    out3 = jax.block_until_ready(image_gradient(x_part, row_tile=16))
    ref3 = _reference(x_part)
    assert out3.shape == (1, 2, 24, 128), out3.shape
    assert jnp.allclose(out3, ref3, atol=1e-5, rtol=1e-5), float(
        jnp.max(jnp.abs(out3 - ref3)))

    print("KERNEL_OK")
</pallas_src>

<mosaic_0001>
module attributes {stable_mosaic.version = 11 : i64} {
  func.func @_img_grad_whole_kernel(%arg0: i32, %arg1: memref<1x16x16xf32, #tpu.memory_space<vmem>>, %arg2: memref<1x2x16x16xf32, #tpu.memory_space<vmem>>) attributes {dimension_semantics = [#tpu.dimension_semantics<parallel>], iteration_bounds = array<i64: 2>, scalar_prefetch = 0 : i64, scratch_operands = 0 : i64, tpu.core_type = #tpu.core_type<tc>, window_params = [{transform_indices = @transform_0, window_bounds = array<i64: 1, 16, 16>}, {transform_indices = @transform_1, window_bounds = array<i64: 1, 2, 16, 16>}]} {
    %c0 = arith.constant 0 : index
    %c0_0 = arith.constant 0 : index
    %c0_1 = arith.constant 0 : index
    %0 = vector.load %arg1[%c0, %c0_0, %c0_1] : memref<1x16x16xf32, #tpu.memory_space<vmem>>, vector<1x16x16xf32>
    %1 = vector.extract_strided_slice %0 {offsets = [0, 0, 1], sizes = [1, 16, 15], strides = [1, 1, 1]} : vector<1x16x16xf32> to vector<1x16x15xf32>
    %2 = vector.extract_strided_slice %0 {offsets = [0, 0, 15], sizes = [1, 16, 1], strides = [1, 1, 1]} : vector<1x16x16xf32> to vector<1x16x1xf32>
    %3 = tpu.concatenate %1, %2 in 2 : vector<1x16x15xf32>, vector<1x16x1xf32> -> vector<1x16x16xf32>
    %4 = vector.extract_strided_slice %0 {offsets = [0, 0, 0], sizes = [1, 16, 1], strides = [1, 1, 1]} : vector<1x16x16xf32> to vector<1x16x1xf32>
    %5 = vector.extract_strided_slice %0 {offsets = [0, 0, 0], sizes = [1, 16, 15], strides = [1, 1, 1]} : vector<1x16x16xf32> to vector<1x16x15xf32>
    %6 = tpu.concatenate %4, %5 in 2 : vector<1x16x1xf32>, vector<1x16x15xf32> -> vector<1x16x16xf32>
    %7 = arith.subf %3, %6 : vector<1x16x16xf32>
    %c0_2 = arith.constant 0 : index
    %c0_3 = arith.constant 0 : index
    %c0_4 = arith.constant 0 : index
    %c0_5 = arith.constant 0 : index
    %8 = vector.load %arg2[%c0_2, %c0_3, %c0_4, %c0_5] : memref<1x2x16x16xf32, #tpu.memory_space<vmem>>, vector<1x1x16x16xf32>
    %9 = vector.shape_cast %8 : vector<1x1x16x16xf32> to vector<1x16x16xf32>
    %10 = vector.shape_cast %7 : vector<1x16x16xf32> to vector<1x1x16x16xf32>
    tpu.vector_store %arg2[%c0_2, %c0_3, %c0_4, %c0_5], %10 {strides = array<i32>} : memref<1x2x16x16xf32, #tpu.memory_space<vmem>>, vector<1x1x16x16xf32>,
    %11 = vector.extract_strided_slice %0 {offsets = [0, 1, 0], sizes = [1, 15, 16], strides = [1, 1, 1]} : vector<1x16x16xf32> to vector<1x15x16xf32>
    %12 = vector.extract_strided_slice %0 {offsets = [0, 15, 0], sizes = [1, 1, 16], strides = [1, 1, 1]} : vector<1x16x16xf32> to vector<1x1x16xf32>
    %13 = tpu.concatenate %11, %12 in 1 : vector<1x15x16xf32>, vector<1x1x16xf32> -> vector<1x16x16xf32>
    %14 = vector.extract_strided_slice %0 {offsets = [0, 0, 0], sizes = [1, 1, 16], strides = [1, 1, 1]} : vector<1x16x16xf32> to vector<1x1x16xf32>
    %15 = vector.extract_strided_slice %0 {offsets = [0, 0, 0], sizes = [1, 15, 16], strides = [1, 1, 1]} : vector<1x16x16xf32> to vector<1x15x16xf32>
    %16 = tpu.concatenate %14, %15 in 1 : vector<1x1x16xf32>, vector<1x15x16xf32> -> vector<1x16x16xf32>
    %17 = arith.subf %13, %16 : vector<1x16x16xf32>
    %c0_6 = arith.constant 0 : index
    %c1 = arith.constant 1 : index
    %c0_7 = arith.constant 0 : index
    %c0_8 = arith.constant 0 : index
    %18 = vector.load %arg2[%c0_6, %c1, %c0_7, %c0_8] : memref<1x2x16x16xf32, #tpu.memory_space<vmem>>, vector<1x1x16x16xf32>
    %19 = vector.shape_cast %18 : vector<1x1x16x16xf32> to vector<1x16x16xf32>
    %20 = vector.shape_cast %17 : vector<1x16x16xf32> to vector<1x1x16x16xf32>
    tpu.vector_store %arg2[%c0_6, %c1, %c0_7, %c0_8], %20 {strides = array<i32>} : memref<1x2x16x16xf32, #tpu.memory_space<vmem>>, vector<1x1x16x16xf32>,
    return
  }
  func.func @transform_0(%arg0: i32) -> (i32, i32, i32) {
    %c0_i32 = arith.constant 0 : i32
    %c0_i32_0 = arith.constant 0 : i32
    %c0_i32_1 = arith.constant 0 : i32
    return %arg0, %c0_i32, %c0_i32_0 : i32, i32, i32
  }
  func.func @transform_1(%arg0: i32) -> (i32, i32, i32, i32) {
    %c0_i32 = arith.constant 0 : i32
    %c0_i32_0 = arith.constant 0 : i32
    %c0_i32_1 = arith.constant 0 : i32
    %c0_i32_2 = arith.constant 0 : i32
    return %arg0, %c0_i32, %c0_i32_0, %c0_i32_1 : i32, i32, i32, i32
  }
}

</mosaic_0001>

<bundles_post_ra>
// kernel: tpu_custom_call.1
= control target key start
LH: loop header
LB: loop body
LE: loop exit
PB: predicated region body
PF: predicated region fallthrough
CT: control target
= control target key end

     0   :  { %6 = vsyncpa [#allocation3], 0  ;;  %s588_s0 = inlined_call_operand.hbm [shape: f32[2,16,16], index: 0, kind: input, shape index: {}]   ;;  %s589_s1 = inlined_call_operand.hbm [shape: f32[2,2,16,16], index: 1, kind: output, shape index: {}]  }
   0x1   :  { %8 = vsyncpa [#allocation3 + $0x1], 0 }
   0x2   :  { %9 = vsyncpa [#allocation4], 0 }
   0x3   :  { %11 = vsyncpa [#allocation4 + $0x1], 0  ;;  %s456_s6 = smov 0   ;;  %s458_s7 = smov 0  }
   0x4   :  { %s460_s8 = smov 0   ;;  %s462_s9 = smov 0  }
   0x5 LB: > { %s477_s10 = sadd.s32 4294967295, %s438_s9   ;;  %s272_s11 = sadd.s32 4294967294, %s438_s9   ;;  %s438_s9 = sphi %s462_s9, %s599_s9   ;;  %s434_s8 = sphi %s460_s8, %s598_s8   ;;  %s430_s7 = sphi %s458_s7, %s597_s7   ;;  %s426_s6 = sphi %s456_s6, %s596_s6  }
   0x6   : > { %s481_s12 = sadd.s32 1, %s438_s9   ;;  %s24_s13 = sadd.s32 1, %s434_s8 }
   0x7   : > { %s21_s14 = ssub.s32 %s438_s9, %s481_s12  ;;  %p31_p0 = scmp.ne.s32.totalorder %s434_s8, %s430_s7 }
   0x8   : > { %p22_p1 = scmp.eq.s32.totalorder %s21_s14, 0  ;;  %p32_p2 = scmp.eq.s32.totalorder %s438_s9, 0 }
   0x9   : > { %p37_p3 = scmp.ne.s32.totalorder %s430_s7, %s426_s6  ;;  %p38_p4 = scmp.eq.s32.totalorder %s477_s10, 0 }
   0xa   : > { %s493_s15 = scalar_select %p22_p1, %s434_s8, %s24_s13  }
   0xb   : > { %p495_p5 = por %p32_p2, %p31_p0  ;;  %p499_p6 = por %p38_p4, %p37_p3 }
   0xc   : > { %p61_p7 = scmp.eq.s32.totalorder %s477_s10, 1  ;;  %p67_p8 = scmp.eq.s32.totalorder %s272_s11, 1 }
   0xd   : > { %p302_p10 = scmp.lt.s32.totalorder %s438_s9, 2  ;;  %s87_s20 = sand.u32 1, %s434_s8  }
   0xe   : > { %p506_p11 = por %p61_p7, %p31_p0  ;;  %p510_p12 = por %p67_p8, %p37_p3 }
   0xf   : > { %s288_s21 = sshll.u32 %s438_s9, 4  ;;  %s275_s22 = sshll.u32 %s87_s20, 4 }
  0x10   : > { %s96_s25 = scalar_lea.hbm %s588_s0, %s288_s21  ;;  %s91_s27 = scalar_lea.vmem [#allocation2], %s275_s22 }
  0x11   : > { %s97_s26 = sshll.u32 %s96_s25, 4  ;;  %s99_s28 = sshll.u32 %s91_s27, 4  ;;  %s98_s26 = int_to_ptr.hbm [resolvable:$true] %s97_s26  ;;  %s100_s28 = int_to_ptr.vmem [resolvable:$true] %s99_s28 }
  0x12   : > { %p521_p13 = pnand %p302_p10, %p495_p5  ;;  %p278_p0 = scmp.ge.s32.totalorder %s438_s9, 1 }
  0x13   : > { %p107_p1 = scmp.lt.s32.totalorder %s438_s9, 3  ;;  %s88_s30 = scalar_lea.sflag [#allocation3], %s87_s20 }
  0x14   : > { %s342_s2 = sshra.s32 %s98_s26, 4  ;;  %p346_p3 = pneg %p521_p13  ;;  %s343_s2 = int_to_ptr.hbm [resolvable:$true] %s342_s2 }
  0x15   : > { %s344_s3 = scalar_lea.hbm %s343_s2, 16  ;;  %s349_s11 = scalar_lea.hbm %s588_s0, 32 }
  0x16   : > { %p345_p2 = scmp.ne.s32.totalorder %s343_s2, %s344_s3  ;;  %p350_p5 = scmp.lt.s32.totalorder %s343_s2, %s588_s0 }
  0x17   : > { %p351_p8 = scmp.lt.s32.totalorder %s349_s11, %s344_s3 }
  0x18   : > { %p347_p4 = pnand %p346_p3, %p345_p2 }
  0x19   : > { %p352_p10 = por %p351_p8, %p350_p5 }
  0x1a   : > { %p348_p7 = pneg %p347_p4 }
  0x1c   : > { %p353_p9 = pnand %p352_p10, %p348_p7 }
  0x1e   : > { %356 = shalt.err (!%p353_p9)
}
  0x1f   : > { %s440_s16 = smov 128   ;;  %s441_s20 = smov 8  }
  0x20   : > { %297 = dma.hbm_to_vmem [thread:$0]  (!%p521_p13), %s98_s26, 256, %s100_s28, %s88_s30, %s440_s16, %s440_s16, %s441_s20  }
  0x21   : > { %p108_p2 = pnand %p278_p0, %p107_p1 }
  0x22   : > { %s542_s21 = sand.u32 (!%p108_p2), 1, %s430_s7  }
  0x23   : > { %111 = sbr.rel (%p108_p2) target bundleno = 173 (0xad), region = 24  ;;  %s279_s22 = sshll.u32 (!%p108_p2), %s542_s21, 4 }
  0x24   : > { %s114_s23 = scalar_lea.sflag (!%p108_p2), [#allocation3], %s542_s21  ;;  %s117_s24 = scalar_lea.vmem (!%p108_p2), [#allocation2], %s279_s22 }
  0x28   : > { %417 = dma.done.wait (%p499_p6), %s114_s23, 256  }
  0x29   : > { %419 = vsyncadd (%p499_p6), %s114_s23, 4294967040  ;;  %v137_v0 = vld [vmem:[%s117_s24] sm:$0xff]  ;;  %v138_v1 = vld [vmem:[%s117_s24 + $0x8] sm:$0xff]  ;;  %vm164_vm0 = vcmask 1046528   ;;  %vm171_vm1 = vcmask 1040384   ;;  %s442_s25 = smov 1  }
  0x2a   : > { %v165_v2 = vrot.slane %v137_v0, 1  ;;  %v166_v3 = vrot.slane %v138_v1, 1  ;;  %v172_v4 = vrot.slane %v137_v0, 7  ;;  %v173_v5 = vrot.slane %v138_v1, 7  ;;  %150 = vrot.lane.b32.xlu1 %v137_v0, %s442_s25  ;;  %s443_s26 = smov 127   ;;  %s280_s27 = sshll.u32 %s542_s21, 5 }
  0x2b   : > { %141 = vrot.lane.b32.xlu0 %v137_v0, %s443_s26  ;;  %vm161_vm2 = vcmask 130048   ;;  %s136_s17 = scalar_lea.vmem [#allocation5], %s280_s27  ;;  %vm156_vm3 = vcmask 7168   ;;  %vm147_vm4 = vcmask 121856   ;;  %s289_s28 = sshll.u32 %s477_s10, 5 }
  0x2c   : > { %v167_v6 = vsel %vm164_vm0, %v165_v2, %v166_v3  ;;  %v170_v7 = vsel %vm164_vm0, %v166_v3, %v138_v1  ;;  %v174_v8 = vsel %vm171_vm1, %v172_v4, %v173_v5  ;;  %v177_v9 = vsel %vm171_vm1, %v137_v0, %v172_v4  ;;  %s195_s2 = scalar_lea.hbm %s589_s1, %s289_s28  ;;  %s196_s3 = sshll.u32 %s136_s17, 4  ;;  %s197_s3 = int_to_ptr.vmem [resolvable:$true] %s196_s3 }
  0x2d   : > { %v178_v10 = vsub.f32 %v167_v6, %v177_v9  ;;  %v179_v11 = vsub.f32 %v170_v7, %v174_v8  ;;  %s198_s4 = sshll.u32 %s195_s2, 4  ;;  %s184_s10 = scalar_lea.sflag [#allocation4], %s542_s21  ;;  %s199_s4 = int_to_ptr.hbm [resolvable:$true] %s198_s4 }
  0x2e   : > { %s386_s5 = sshra.s32 %s199_s4, 4  ;;  %s392_s16 = scalar_lea.hbm %s589_s1, 64  ;;  %s387_s5 = int_to_ptr.hbm [resolvable:$true] %s386_s5 }
  0x2f   : > { %281 = vst.msk [vmem:[%s136_s17 + $0x10] sm:$0xff] %vm161_vm2, %v178_v10  ;;  %s388_s11 = scalar_lea.hbm %s387_s5, 32  ;;  %p393_p0 = scmp.lt.s32.totalorder %s387_s5, %s589_s1 }
  0x30   : > { %282 = vst.msk [vmem:[%s136_s17 + $0x18] sm:$0xff] %vm161_vm2, %v179_v11  ;;  %p389_p6 = scmp.ne.s32.totalorder %s387_s5, %s388_s11  ;;  %p394_p1 = scmp.lt.s32.totalorder %s392_s16, %s388_s11 }
  0x32   : > { %152 = vrot.lane.b32.xlu1 %v138_v1, %s442_s25  ;;  %p390_p9 = pnand %p389_p6, %p506_p11  ;;  %p395_p3 = por %p394_p1, %p393_p0 }
  0x33   : > { %143 = vrot.lane.b32.xlu0 %v138_v1, %s443_s26 }
  0x34   : > { %p391_p13 = pneg %p390_p9 }
  0x36   : > { %p396_p4 = pnand %p395_p3, %p391_p13 }
  0x9c   : > { %v151_v12 = vpop.permute.xlu1 %150 }
  0x9d   : > { %v142_v13 = vpop.permute.xlu0 %141  ;;  %v157_v14 = vsel %vm156_vm3, %v137_v0, %v151_v12 }
  0x9e   : > { %v148_v15 = vsel %vm147_vm4, %v142_v13, %v137_v0 }
  0x9f   : > { %v159_v16 = vsub.f32 %v148_v15, %v157_v14 }
  0xa1   : > { %162 = vst.msk [vmem:[%s136_s17] sm:$0xff] %vm161_vm2, %v159_v16 }
  0xa4   : > { %v153_v17 = vpop.permute.xlu1 %152 }
  0xa5   : > { %v144_v18 = vpop.permute.xlu0 %143  ;;  %v158_v19 = vsel %vm156_vm3, %v138_v1, %v153_v17 }
  0xa6   : > { %v149_v20 = vsel %vm147_vm4, %v144_v18, %v138_v1 }
  0xa7   : > { %v160_v21 = vsub.f32 %v149_v20, %v158_v19 }
  0xa9   : > { %163 = vst.msk [vmem:[%s136_s17 + $0x8] sm:$0xff] %vm161_vm2, %v160_v21 }
  0xaa   : > { %399 = shalt.err (!%p396_p4)
}
  0xab   : > { %s444_s21 = smov 128   ;;  %s445_s23 = smov 8  }
  0xac   : > { %292 = dma.vmem_to_hbm [thread:$0]  (%p506_p11), %s197_s3, 512, %s199_s4, %s184_s10, %s444_s21, %s444_s21, %s445_s23  }
  0xad PF: > { %s213_s24 = sand.u32 1, %s426_s6   ;;  %p595_p7 = scmp.ge.s32.totalorder %s438_s9, 2 }
  0xae   : > { %s214_s25 = scalar_lea.sflag [#allocation4], %s213_s24 }
  0xaf   : > { %p299_p5 = pnand %p595_p7, %p510_p12 }
  0xb1   : > { %p300_p8 = pneg %p299_p5 }
  0xb3   : > { %421 = dma.done.wait (%p300_p8), %s214_s25, 512  }
  0xb4   : > { %423 = vsyncadd (%p300_p8), %s214_s25, 4294966784  ;;  %p14_p10 = scmp.ge.s32.totalorder %s481_s12, 4   ;;  %s596_s6 = smov %s430_s7 }
  0xb5   : > { %s597_s7 = smov %s434_s8  ;;  %s598_s8 = smov %s493_s15 }
  0xb6   : > { %s599_s9 = smov %s481_s12  ;;  %16 = sbr.rel (!%p14_p10) target bundleno = 5 (0x5), region = 70 }
  0xbb   :  { %220 = vsyncpa [#allocation3], 1 }
  0xbc   :  { %222 = vsyncpa [#allocation3 + $0x1], 1 }
  0xbd   :  { %223 = vsyncpa [#allocation4], 1 }
  0xbe   :  { %225 = vsyncpa [#allocation4 + $0x1], 1 }

</bundles_post_ra>
